<compile_context>
chip_gen: v7x
topology: tpu7x:2x2x1
jax: 0.10.0
libtpu: 0.0.40
codegen_flags: <defaults>
</compile_context>

<pallas_src>
import jax
import jax.numpy as jnp
from jax.experimental import pallas as pl
from jax.experimental.pallas import tpu as pltpu


# ---------------------------------------------------------------------------
# Kernel
# ---------------------------------------------------------------------------
def residual_linear_kernel(x_ref, w_ref, xres_ref, b_ref, o_ref, acc_ref):
    # x_ref:    (tm, tk)  block of x at (i, k)     -- matmul LHS (compute dtype)
    # w_ref:    (tk, tn)  block of W at (k, j)     -- matmul RHS (compute dtype)
    # xres_ref: (tm, tn)  block of x at (i, j)     -- residual term (same array as x_ref)
    # b_ref:    (1,  tn)  block of bias at (0, j)
    # o_ref:    (tm, tn)  output block at (i, j)
    # acc_ref:  (tm, tn)  fp32 accumulator scratch (persists across k)
    k = pl.program_id(2)

    @pl.when(k == 0)
    def _():
        acc_ref[...] = jnp.zeros_like(acc_ref)

    acc_ref[...] += jnp.dot(
        x_ref[...], w_ref[...], preferred_element_type=jnp.float32
    )

    @pl.when(k == pl.num_programs(2) - 1)
    def _():
        # bias + residual fused once per output tile, in fp32, then cast.
        o_ref[...] = (
            acc_ref[...]
            + b_ref[...].astype(jnp.float32)
            + xres_ref[...].astype(jnp.float32)
        ).astype(o_ref.dtype)


# ---------------------------------------------------------------------------
# Tile selection / VMEM budgeting
# ---------------------------------------------------------------------------
def _round_up(v, m):
    return ((v + m - 1) // m) * m


def _vmem_capacity_bytes():
    """Per-core VMEM capacity; conservative default if the query is unavailable."""
    try:
        return int(pltpu.get_tpu_info().vmem_capacity_bytes)
    except Exception:
        return 64 << 20  # v7x per-TC VMEM — safe lower bound across generations


def _tile_options(dim, candidates, align):
    """Tile sizes to try (largest first); a candidate is kept only if the
    zero-padding it implies is modest.  All candidates are (8,128)-aligned."""
    max_waste = max(dim // 8, align - 1)
    opts = [c for c in candidates if _round_up(dim, c) - dim <= max_waste]
    if not opts:  # defensive; the smallest candidate always passes in practice
        opts = [_round_up(dim, align)]
    return opts


def _select_tiles(m, hidden, in_bytes, out_bytes, vmem_budget):
    """Largest tile triple whose double-buffered footprint fits the budget."""
    tm_opts = _tile_options(m, (1024, 512, 256, 128, 64, 32, 16, 8), 8)
    tn_opts = _tile_options(hidden, (512, 256, 128), 128)
    tk_opts = _tile_options(hidden, (2048, 1024, 512, 256, 128), 128)

    def footprint(tm, tn, tk):
        return (
            2 * tm * tk * in_bytes      # x (matmul LHS), double-buffered
            + 2 * tk * tn * in_bytes    # W
            + 2 * tm * tn * in_bytes    # x (residual view)
            + 2 * tn * 4                # bias
            + 2 * tm * tn * out_bytes   # output
            + tm * tn * 4               # fp32 accumulator scratch
        )

    for tk in tk_opts:            # keep the reduction tile large (fewer k steps,
        for tm in tm_opts:        # less accumulator traffic), shrink tn first.
            for tn in tn_opts:
                fp = footprint(tm, tn, tk)
                if fp <= vmem_budget:
                    return tm, tn, tk, fp
    tm, tn, tk = tm_opts[-1], tn_opts[-1], tk_opts[-1]
    return tm, tn, tk, footprint(tm, tn, tk)


# ---------------------------------------------------------------------------
# Wrapper
# ---------------------------------------------------------------------------
def residual_linear(x, w, b, *, compute_dtype=jnp.bfloat16):
    """out = x @ w + b + x, with x of shape [batch, seq, hidden].

    compute_dtype: dtype for the matmul operands (default bf16 — native MXU
    rate on v5e/v6e/v7x).  Accumulation, bias and residual math run in fp32.
    Store `w` already in compute_dtype to hoist the per-call cast.
    Pass compute_dtype=None to keep the operands in x.dtype (e.g. fp32).
    """
    batch, seq, hidden = x.shape
    assert w.shape == (hidden, hidden), "Residual requires fn to preserve the feature dim"
    assert b.shape == (hidden,)

    m = batch * seq
    out_dtype = x.dtype
    cdt = jnp.dtype(x.dtype) if compute_dtype is None else jnp.dtype(compute_dtype)
    in_bytes = cdt.itemsize
    out_bytes = jnp.dtype(out_dtype).itemsize

    # ---- per-generation VMEM budgeting -------------------------------------
    vmem_cap = _vmem_capacity_bytes()
    vmem_budget = vmem_cap // 2                       # leave headroom for compiler scratch
    tm, tn, tk, fp = _select_tiles(m, hidden, in_bytes, out_bytes, vmem_budget)
    vmem_limit = int(min(vmem_cap * 3 // 4, max(2 * fp + (8 << 20), 32 << 20)))

    m_p = _round_up(m, tm)
    h_p = _round_up(hidden, max(tn, tk))              # tiles are powers of two

    # ---- operand prep: single compute-dtype copy of x feeds matmul + residual
    x2d = x.reshape(m, hidden)
    x_c = x2d if x2d.dtype == cdt else x2d.astype(cdt)
    w_c = w if w.dtype == cdt else w.astype(cdt)      # no-op if W stored in cdt
    b2d = b.reshape(1, hidden)

    if m_p != m or h_p != hidden:
        x_c = jnp.pad(x_c, ((0, m_p - m), (0, h_p - hidden)))
    if h_p != hidden:
        w_c = jnp.pad(w_c, ((0, h_p - hidden), (0, h_p - hidden)))
        b2d = jnp.pad(b2d, ((0, 0), (0, h_p - hidden)))

    grid = (m_p // tm, h_p // tn, h_p // tk)

    cost = pl.CostEstimate(
        flops=2 * m_p * h_p * h_p,
        transcendentals=0,
        bytes_accessed=(
            m_p * h_p * in_bytes        # x (read once; matmul + residual share it)
            + h_p * h_p * in_bytes      # W
            + h_p * 4                   # bias
            + m_p * h_p * out_bytes     # output
        ),
    )

    out2d = pl.pallas_call(
        residual_linear_kernel,
        out_shape=jax.ShapeDtypeStruct((m_p, h_p), out_dtype),
        grid_spec=pltpu.PrefetchScalarGridSpec(
            num_scalar_prefetch=0,
            grid=grid,
            in_specs=[
                pl.BlockSpec((tm, tk), lambda i, j, k: (i, k)),  # x (matmul LHS)
                pl.BlockSpec((tk, tn), lambda i, j, k: (k, j)),  # W
                pl.BlockSpec((tm, tn), lambda i, j, k: (i, j)),  # x (residual)
                pl.BlockSpec((1, tn), lambda i, j, k: (0, j)),   # bias
            ],
            out_specs=pl.BlockSpec((tm, tn), lambda i, j, k: (i, j)),
            scratch_shapes=[pltpu.VMEM((tm, tn), jnp.float32)],
        ),
        compiler_params=pltpu.CompilerParams(
            dimension_semantics=("parallel", "parallel", "arbitrary"),
            vmem_limit_bytes=vmem_limit,
        ),
        cost_estimate=cost,
    )(x_c, w_c, x_c, b2d)                             # x passed once, viewed twice

    if m_p != m or h_p != hidden:
        out2d = out2d[:m, :hidden]
    return out2d.reshape(batch, seq, hidden)


# ---------------------------------------------------------------------------
# Demo / correctness checks
# ---------------------------------------------------------------------------
if __name__ == "__main__":
    # small shapes consistent with a transformer residual block
    batch, seq, hidden = 2, 8, 128

    key = jax.random.PRNGKey(0)
    kx, kw, kb = jax.random.split(key, 3)

    x = jax.random.normal(kx, (batch, seq, hidden), dtype=jnp.float32)
    w = jax.random.normal(kw, (hidden, hidden), dtype=jnp.float32) * (1.0 / hidden**0.5)
    b = jax.random.normal(kb, (hidden,), dtype=jnp.float32) * 0.01

    # Parameters stored once in the compute dtype (hoists the per-call W cast).
    w_bf16 = w.astype(jnp.bfloat16)

    # 1) default bf16-MXU path; reference uses the same bf16-rounded operands
    #    (documented tradeoff: residual sourced from bf16-stored x).
    out = jax.block_until_ready(residual_linear(x, w_bf16, b))
    xb = x.astype(jnp.bfloat16).astype(jnp.float32)
    wb = w_bf16.astype(jnp.float32)
    ref_bf = jnp.einsum("bsh,hk->bsk", xb, wb) + b + xb
    assert jnp.allclose(out, ref_bf, atol=2e-3, rtol=2e-3), "bf16 path mismatch"

    # 2) fp32 path: tight check against the exact fp32 reference fn(x) + x.
    out_f32 = jax.block_until_ready(residual_linear(x, w, b, compute_dtype=None))
    ref = jnp.einsum("bsh,hk->bsk", x, w) + b + x
    assert jnp.allclose(out_f32, ref, atol=1e-4, rtol=1e-4), "fp32 path mismatch"

    # 3) ragged M (2*5 = 10 rows) exercises the zero-pad + slice path.
    x_r = jax.random.normal(kx, (2, 5, hidden), dtype=jnp.float32)
    out_r = jax.block_until_ready(residual_linear(x_r, w, b, compute_dtype=None))
    ref_r = jnp.einsum("bsh,hk->bsk", x_r, w) + b + x_r
    assert jnp.allclose(out_r, ref_r, atol=1e-4, rtol=1e-4), "ragged-shape mismatch"

    print("KERNEL_OK")
</pallas_src>

<mosaic_0001>
module attributes {stable_mosaic.version = 11 : i64} {
  func.func @residual_linear_kernel(%arg0: i32, %arg1: i32, %arg2: i32, %arg3: memref<16x128xbf16, #tpu.memory_space<vmem>>, %arg4: memref<128x128xbf16, #tpu.memory_space<vmem>>, %arg5: memref<16x128xbf16, #tpu.memory_space<vmem>>, %arg6: memref<1x128xf32, #tpu.memory_space<vmem>>, %arg7: memref<16x128xf32, #tpu.memory_space<vmem>>, %arg8: memref<16x128xf32, #tpu.memory_space<vmem>>) attributes {dimension_semantics = [#tpu.dimension_semantics<parallel>, #tpu.dimension_semantics<parallel>, #tpu.dimension_semantics<arbitrary>], iteration_bounds = array<i64: 1, 1, 1>, scalar_prefetch = 0 : i64, scratch_operands = 1 : i64, tpu.core_type = #tpu.core_type<tc>, window_params = [{transform_indices = @transform_0, window_bounds = array<i64: 16, 128>}, {transform_indices = @transform_1, window_bounds = array<i64: 128, 128>}, {transform_indices = @transform_2, window_bounds = array<i64: 16, 128>}, {transform_indices = @transform_3, window_bounds = array<i64: 1, 128>}, {transform_indices = @transform_4, window_bounds = array<i64: 16, 128>}]} {
    %c0_i32 = arith.constant 0 : i32
    %0 = arith.cmpi eq, %arg2, %c0_i32 : i32
    %1 = arith.extui %0 : i1 to i32
    %c0_i32_0 = arith.constant 0 : i32
    %2 = arith.cmpi ne, %1, %c0_i32_0 : i32
    scf.if %2 {
      %cst_10 = arith.constant 0.000000e+00 : f32
      %12 = vector.broadcast %cst_10 : f32 to vector<16x128xf32>
      %c0_11 = arith.constant 0 : index
      %c0_12 = arith.constant 0 : index
      %13 = vector.load %arg8[%c0_11, %c0_12] : memref<16x128xf32, #tpu.memory_space<vmem>>, vector<16x128xf32>
      tpu.vector_store %arg8[%c0_11, %c0_12], %12 {strides = array<i32>} : memref<16x128xf32, #tpu.memory_space<vmem>>, vector<16x128xf32>,
    } else {
    }
    %c0 = arith.constant 0 : index
    %c0_1 = arith.constant 0 : index
    %3 = vector.load %arg8[%c0, %c0_1] : memref<16x128xf32, #tpu.memory_space<vmem>>, vector<16x128xf32>
    %c0_2 = arith.constant 0 : index
    %c0_3 = arith.constant 0 : index
    %4 = vector.load %arg3[%c0_2, %c0_3] : memref<16x128xbf16, #tpu.memory_space<vmem>>, vector<16x128xbf16>
    %c0_4 = arith.constant 0 : index
    %c0_5 = arith.constant 0 : index
    %5 = vector.load %arg4[%c0_4, %c0_5] : memref<128x128xbf16, #tpu.memory_space<vmem>>, vector<128x128xbf16>
    %cst = arith.constant dense<0.000000e+00> : vector<16x128xf32>
    %6 = tpu.matmul %4, %5, %cst {dimension_numbers = #tpu.dot_dimension_numbers<[1], [0], [0], [1], [0, 0, 1, 1], [], []>} : vector<16x128xbf16>, vector<128x128xbf16>, vector<16x128xf32> -> vector<16x128xf32>
    %7 = arith.addf %3, %6 : vector<16x128xf32>
    %c0_6 = arith.constant 0 : index
    %c0_7 = arith.constant 0 : index
    %8 = vector.load %arg8[%c0_6, %c0_7] : memref<16x128xf32, #tpu.memory_space<vmem>>, vector<16x128xf32>
    tpu.vector_store %arg8[%c0_6, %c0_7], %7 {strides = array<i32>} : memref<16x128xf32, #tpu.memory_space<vmem>>, vector<16x128xf32>,
    %c0_i32_8 = arith.constant 0 : i32
    %9 = arith.cmpi eq, %arg2, %c0_i32_8 : i32
    %10 = arith.extui %9 : i1 to i32
    %c0_i32_9 = arith.constant 0 : i32
    %11 = arith.cmpi ne, %10, %c0_i32_9 : i32
    scf.if %11 {
      %c0_10 = arith.constant 0 : index
      %c0_11 = arith.constant 0 : index
      %12 = vector.load %arg8[%c0_10, %c0_11] : memref<16x128xf32, #tpu.memory_space<vmem>>, vector<16x128xf32>
      %c0_12 = arith.constant 0 : index
      %c0_13 = arith.constant 0 : index
      %13 = vector.load %arg6[%c0_12, %c0_13] : memref<1x128xf32, #tpu.memory_space<vmem>>, vector<1x128xf32>
      %14 = vector.broadcast %13 : vector<1x128xf32> to vector<16x128xf32>
      %15 = arith.addf %12, %14 : vector<16x128xf32>
      %c0_14 = arith.constant 0 : index
      %c0_15 = arith.constant 0 : index
      %16 = vector.load %arg5[%c0_14, %c0_15] : memref<16x128xbf16, #tpu.memory_space<vmem>>, vector<16x128xbf16>
      %17 = arith.extf %16 : vector<16x128xbf16> to vector<16x128xf32>
      %18 = arith.addf %15, %17 : vector<16x128xf32>
      %c0_16 = arith.constant 0 : index
      %c0_17 = arith.constant 0 : index
      %19 = vector.load %arg7[%c0_16, %c0_17] : memref<16x128xf32, #tpu.memory_space<vmem>>, vector<16x128xf32>
      tpu.vector_store %arg7[%c0_16, %c0_17], %18 {strides = array<i32>} : memref<16x128xf32, #tpu.memory_space<vmem>>, vector<16x128xf32>,
    } else {
    }
    return
  }
  func.func @transform_0(%arg0: i32, %arg1: i32, %arg2: i32) -> (i32, i32) {
    %c0_i32 = arith.constant 0 : i32
    return %arg0, %arg2 : i32, i32
  }
  func.func @transform_1(%arg0: i32, %arg1: i32, %arg2: i32) -> (i32, i32) {
    %c0_i32 = arith.constant 0 : i32
    return %arg2, %arg1 : i32, i32
  }
  func.func @transform_2(%arg0: i32, %arg1: i32, %arg2: i32) -> (i32, i32) {
    %c0_i32 = arith.constant 0 : i32
    return %arg0, %arg1 : i32, i32
  }
  func.func @transform_3(%arg0: i32, %arg1: i32, %arg2: i32) -> (i32, i32) {
    %c0_i32 = arith.constant 0 : i32
    %c0_i32_0 = arith.constant 0 : i32
    return %c0_i32, %arg1 : i32, i32
  }
  func.func @transform_4(%arg0: i32, %arg1: i32, %arg2: i32) -> (i32, i32) {
    %c0_i32 = arith.constant 0 : i32
    return %arg0, %arg1 : i32, i32
  }
}

</mosaic_0001>

<bundles_post_ra>
// kernel: tpu_custom_call.1
= control target key start
LH: loop header
LB: loop body
LE: loop exit
PB: predicated region body
PF: predicated region fallthrough
CT: control target
= control target key end

     0   :  { %9 = vsyncpa [#allocation4], 0  ;;  %s483_s0 = inlined_call_operand.hbm [shape: bf16[16,128], index: 0, kind: input, shape index: {}]   ;;  %s484_s1 = inlined_call_operand.hbm [shape: bf16[128,128], index: 1, kind: input, shape index: {}]   ;;  %s485_s2 = inlined_call_operand.hbm [shape: bf16[16,128], index: 2, kind: input, shape index: {}]   ;;  %s486_s3 = inlined_call_operand.vmem [shape: f32[1,128], index: 3, kind: input, shape index: {}]   ;;  %s487_s4 = inlined_call_operand.hbm [shape: f32[16,128], index: 4, kind: output, shape index: {}]  }
   0x1   :  { %10 = vsyncpa [#allocation7], 0 }
   0x2   :  { %11 = vsyncpa [#allocation5], 0  ;;  %s381_s15 = smov [#allocation6]   ;;  %s382_s17 = smov [#allocation3]  }
   0x3   :  { %s29_s16 = sshll.u32 %s381_s15, 4  ;;  %s17_s18 = sshll.u32 %s382_s17, 4  ;;  %s30_s16 = int_to_ptr.vmem [resolvable:$true] %s29_s16  ;;  %s416_s18 = int_to_ptr.vmem [resolvable:$true] %s17_s18 }
   0x4   :  { %s287_s21 = scalar_lea.hbm %s484_s1, 1024 }
   0x5   :  { %p288_p0 = scmp.ne.s32.totalorder %s484_s1, %s287_s21  ;;  %p291_p1 = scmp.lt.u32.totalorder %s287_s21, %s484_s1 }
   0x7   :  { %p293_p2 = pnand %p291_p1, %p288_p0 }
   0x9   :  { %296 = shalt.err (!%p293_p2)
}
   0xa   :  { %s297_s26 = scalar_lea.vmem %s30_s16, 1024  ;;  %p302_p4 = scmp.lt.s32.totalorder %s30_s16, %s30_s16 }
   0xb   :  { %p298_p3 = scmp.ne.s32.totalorder %s30_s16, %s297_s26  ;;  %p303_p5 = scmp.lt.s32.totalorder %s297_s26, %s297_s26 }
   0xd   :  { %p304_p6 = por %p303_p5, %p302_p4 }
   0xf   :  { %p305_p7 = pnand %p304_p6, %p298_p3 }
  0x11   :  { %308 = shalt.err (!%p305_p7)
}
  0x12   :  { %s383_s27 = smov 64   ;;  %s384_s28 = smov 4  }
  0x13   :  { %35 = dma.hbm_to_vmem [thread:$0]  %s484_s1, 1024, %s30_s16, [#allocation7], %s383_s27, %s383_s27, %s384_s28  }
  0x14   :  { %s309_s7 = scalar_lea.hbm %s483_s0, 128 }
  0x15   :  { %p310_p8 = scmp.ne.s32.totalorder %s483_s0, %s309_s7  ;;  %p313_p9 = scmp.lt.u32.totalorder %s309_s7, %s483_s0 }
  0x17   :  { %p315_p10 = pnand %p313_p9, %p310_p8 }
  0x19   :  { %318 = shalt.err (!%p315_p10)
}
  0x1a   :  { %s319_s12 = scalar_lea.vmem %s416_s18, 128  ;;  %p324_p12 = scmp.lt.s32.totalorder %s416_s18, %s416_s18 }
  0x1b   :  { %p320_p11 = scmp.ne.s32.totalorder %s416_s18, %s319_s12  ;;  %p325_p13 = scmp.lt.s32.totalorder %s319_s12, %s319_s12 }
  0x1d   :  { %p326_p0 = por %p325_p13, %p324_p12 }
  0x1f   :  { %p327_p1 = pnand %p326_p0, %p320_p11 }
  0x21   :  { %330 = shalt.err (!%p327_p1)
}
  0x22   :  { %23 = dma.hbm_to_vmem [thread:$0]  %s483_s0, 128, %s416_s18, [#allocation4], %s383_s27, %s383_s27, %s384_s28  }
  0x23   :  { %s385_s14 = smov [#allocation8]   ;;  %s331_s19 = scalar_lea.hbm %s485_s2, 128 }
  0x24   :  { %s41_s15 = sshll.u32 %s385_s14, 4  ;;  %p332_p2 = scmp.ne.s32.totalorder %s485_s2, %s331_s19  ;;  %s42_s15 = int_to_ptr.vmem [resolvable:$true] %s41_s15 }
  0x25   :  { %p335_p3 = scmp.lt.u32.totalorder %s331_s19, %s485_s2 }
  0x27   :  { %p337_p4 = pnand %p335_p3, %p332_p2 }
  0x29   :  { %340 = shalt.err (!%p337_p4)
}
  0x2a   :  { %s341_s24 = scalar_lea.vmem %s42_s15, 128  ;;  %p346_p6 = scmp.lt.s32.totalorder %s42_s15, %s42_s15 }
  0x2b   :  { %p342_p5 = scmp.ne.s32.totalorder %s42_s15, %s341_s24  ;;  %p347_p7 = scmp.lt.s32.totalorder %s341_s24, %s341_s24 }
  0x2d   :  { %p348_p8 = por %p347_p7, %p346_p6 }
  0x2f   :  { %p349_p9 = pnand %p348_p8, %p342_p5 }
  0x31   :  { %352 = shalt.err (!%p349_p9)
}
  0x32   :  { %47 = dma.hbm_to_vmem [thread:$0]  %s485_s2, 128, %s42_s15, [#allocation7], %s383_s27, %s383_s27, %s384_s28  }
  0x33   :  { %375 = dma.done.wait [#allocation4], 128  }
  0x34   :  { %376 = vsyncadd [#allocation4], 4294967168 }
  0x35   :  { %377 = dma.done.wait [#allocation7], 1152  }
  0x36   :  { %378 = vsyncadd [#allocation7], 4294966144  ;;  %v386_v0 = vmov 0.0   ;;  %vm387_vm0 = vmmov 0   ;;  %v278_v1 = vld [vmem:[#allocation6] sm:$0xff]   ;;  %v279_v2 = vld [vmem:[#allocation6 + $0x8] sm:$0xff]  }
  0x37   :  { %248 = vmatprep.subr.bf16.mxu0 %v386_v0  ;;  %264 = vmatprep.mubr.msk.bf16.mxu0 %vm387_vm0, %v386_v0  ;;  %v280_v3 = vld [vmem:[#allocation6 + $0x10] sm:$0xff]   ;;  %v281_v4 = vld [vmem:[#allocation6 + $0x18] sm:$0xff]   ;;  %v282_v5 = vld [vmem:[#allocation6 + $0x20] sm:$0xff]   ;;  %s388_s26 = smov [#allocation9]  }
  0x38   :  { %249 = vmatpush3.bf16.msra.mxu0 %v278_v1  ;;  %v283_v6 = vld [vmem:[#allocation6 + $0x28] sm:$0xff]   ;;  %v284_v7 = vld [vmem:[#allocation6 + $0x30] sm:$0xff]   ;;  %v285_v8 = vld [vmem:[#allocation6 + $0x38] sm:$0xff]   ;;  %s212_s27 = sshll.u32 %s388_s26, 4  ;;  %s213_s27 = int_to_ptr.vmem [resolvable:$true] %s212_s27 }
  0x39   :  { %250 = vmatprep.subr.bf16.mxu0 %v386_v0  ;;  %v286_v9 = vld [vmem:[#allocation3] sm:$0xff]   ;;  %v236_v10 = vld [vmem:[#allocation8] sm:$0xff]   ;;  %s353_s28 = scalar_lea.vmem %s213_s27, 256  ;;  %p358_p11 = scmp.lt.s32.totalorder %s213_s27, %s213_s27 }
  0x3a   :  { %v234_v11 = vld [vmem:[%s486_s3] ss:$0 sm:$0xff]  ;;  %v237_v12 = vunpack.c.l.bf16 %v236_v10  ;;  %v238_v16 = vunpack.c.h.bf16 %v236_v10  ;;  %p354_p10 = scmp.ne.s32.totalorder %s213_s27, %s353_s28  ;;  %p359_p12 = scmp.lt.s32.totalorder %s353_s28, %s353_s28 }
  0x3c   :  { %251 = vmatpush3.bf16.msra.mxu0 %v279_v2  ;;  %p360_p13 = por %p359_p12, %p358_p11 }
  0x3d   :  { %252 = vmatprep.subr.bf16.mxu0 %v386_v0 }
  0x3e   :  { %p361_p0 = pnand %p360_p13, %p354_p10 }
  0x40   :  { %253 = vmatpush3.bf16.msra.mxu0 %v280_v3 }
  0x41   :  { %254 = vmatprep.subr.bf16.mxu0 %v386_v0 }
  0x44   :  { %255 = vmatpush3.bf16.msra.mxu0 %v281_v4 }
  0x45   :  { %256 = vmatprep.subr.bf16.mxu0 %v386_v0 }
  0x48   :  { %257 = vmatpush3.bf16.msra.mxu0 %v282_v5 }
  0x49   :  { %258 = vmatprep.subr.bf16.mxu0 %v386_v0 }
  0x4c   :  { %259 = vmatpush3.bf16.msra.mxu0 %v283_v6 }
  0x4d   :  { %260 = vmatprep.subr.bf16.mxu0 %v386_v0 }
  0x50   :  { %261 = vmatpush3.bf16.msra.mxu0 %v284_v7 }
  0x51   :  { %262 = vmatprep.subr.bf16.mxu0 %v386_v0 }
  0x54   :  { %263 = vmatpush3.bf16.msra.mxu0 %v285_v8 }
  0x57   :  { %265 = vmatmul.mubr.bf16.vlgmr.msra.gmra.mrb[0].mxu0 %v286_v9 }
 0x12a   :  { %v174_v13 = vpop.f32.mrb[0].mxu0 }
 0x12b   :  { %v197_v14 = vadd.f32 %v234_v11, %v174_v13  ;;  %v266_v15 = vpop.f32.mrb[1].mxu0 }
 0x12c   :  { %v177_v17 = vpop.f32.mrb[2].mxu0 }
 0x12d   :  { %v203_v18 = vadd.f32 %v237_v12, %v197_v14  ;;  %v198_v19 = vadd.f32 %v234_v11, %v177_v17  ;;  %v267_v20 = vpop.f32.mrb[3].mxu0 }
 0x12f   :  { %205 = vst [vmem:[#allocation9] sm:$0xff] %v203_v18  ;;  %v204_v21 = vadd.f32 %v238_v16, %v198_v19 }
 0x131   :  { %206 = vst [vmem:[#allocation9 + $0x8] sm:$0xff] %v204_v21 }
 0x132   :  { %364 = shalt.err (!%p361_p0)
}
 0x133   :  { %s365_s30 = scalar_lea.hbm %s487_s4, 256 }
 0x134   :  { %p366_p1 = scmp.ne.s32.totalorder %s487_s4, %s365_s30  ;;  %p369_p2 = scmp.lt.u32.totalorder %s365_s30, %s487_s4 }
 0x136   :  { %p371_p3 = pnand %p369_p2, %p366_p1 }
 0x138   :  { %374 = shalt.err (!%p371_p3)
}
 0x139   :  { %s389_s9 = smov 128   ;;  %s390_s10 = smov 8  }
 0x13a   :  { %218 = dma.vmem_to_hbm [thread:$0]  %s213_s27, 256, %s487_s4, [#allocation5], %s389_s9, %s389_s9, %s390_s10  }
 0x13b   :  { %379 = dma.done.wait [#allocation5], 256  }
 0x13c   :  { %380 = vsyncadd [#allocation5], 4294967040 }
 0x13d   :  { %222 = vsyncpa [#allocation4], 1 }
 0x13e   :  { %223 = vsyncpa [#allocation7], 1 }
 0x13f   :  { %224 = vsyncpa [#allocation5], 1 }

</bundles_post_ra>
